<compile_context>
chip_gen: v6e
topology: v6e:2x2x1
jax: 0.10.0
libtpu: 0.0.40
codegen_flags: <defaults>
</compile_context>

<pallas_src>
import numpy as np
import jax
import jax.numpy as jnp
from jax.experimental import pallas as pl
from jax.experimental.pallas import tpu as pltpu


def scale_dimension(dim, scale):
    # identical to the PyTorch module
    return int((float(dim) - 1.0) * scale + 1.0) if dim % 2 == 1 else int(float(dim) * scale)


def bilinear_matrix(in_size, out_size):
    """Row-stochastic interpolation matrix for bilinear resize, align_corners=True."""
    A = np.zeros((out_size, in_size), dtype=np.float32)
    if out_size == 1:
        A[0, 0] = 1.0
        return A
    for i in range(out_size):
        src = i * (in_size - 1) / (out_size - 1)
        lo = int(np.floor(src))
        hi = min(lo + 1, in_size - 1)
        frac = src - lo
        A[i, lo] += 1.0 - frac
        A[i, hi] += frac
    return A


def _candidate_offsets(arch):
    """Union of (dy, dx) taps used by the arch-selected candidate ops."""
    offsets = []

    def add(new):
        for o in new:
            if o not in offsets:
                offsets.append(o)

    if arch[0]:                                   # 1x1 conv
        add([(0, 0)])
    if arch[1]:                                   # 3x3 conv, padding=1
        add([(dy, dx) for dy in (-1, 0, 1) for dx in (-1, 0, 1)])
    if arch[2]:                                   # 3x3 dilated conv, dilation=2, padding=2
        add([(2 * dy, 2 * dx) for dy in (-1, 0, 1) for dx in (-1, 0, 1)])
    return offsets


def _pick_batch_fold(N, HW_out, lane=128, l_target=1024):
    """Pick how many batch samples to fold into the lane dim per grid step."""
    best_d, best_key = 1, None
    for d in range(1, N + 1):
        if N % d:
            continue
        L = d * HW_out
        # prefer: lane-aligned L; then L not above target; then the largest such L
        key = (L % lane == 0, L <= l_target, L if L <= l_target else -L)
        if best_key is None or key > best_key:
            best_key, best_d = key, d
    return best_d


def _make_kernel(shifts, HW_out, C_in, NB, L, T, K_pad):
    """Kernel closure over the static tap shifts / sizes."""

    def kernel(x_ref, kt_ref, wf_ref, mask_ref, out_ref, h_ref, col_ref):
        # (1) Bilinear resize (align_corners=True): one bf16 MXU matmul against the
        #     batch-independent kron(A_h, A_w)^T, f32 accumulation.
        #     x_ref[0]: [NB*C_in, HW_in] (n-major sublanes), kt_ref: [HW_in, HW_out].
        xr = jnp.dot(x_ref[0], kt_ref[...], preferred_element_type=jnp.float32)
        h = jnp.maximum(xr, 0.0)                           # shared ReLU of every branch

        # (2) Regroup batch-major sublanes -> channel sublanes, batch folded into the
        #     lane dim (lane index = n*HW_out + ho*W_out + wo).  NB tiny static copies.
        for n in range(NB):
            h_ref[:, n * HW_out:(n + 1) * HW_out] = h[n * C_in:(n + 1) * C_in, :]
        hs = h_ref[...]                                    # [C_in, L] f32

        # (3) im2col via XLU lane rolls; fuse the f32 mask multiply (zeroes wrapped /
        #     out-of-image lanes, incl. cross-batch wraps) and the bf16 cast into each
        #     per-tap col write.
        for t, s in enumerate(shifts):
            tap = hs if s == 0 else pltpu.roll(hs, shift=(-s) % L, axis=1)
            m = mask_ref[t * C_in:(t + 1) * C_in, :]
            col_ref[t * C_in:(t + 1) * C_in, :] = (tap * m).astype(col_ref.dtype)

        # Zero the K-alignment pad rows (their wf columns are zero, but garbage could
        # still poison the f32 accumulation via Inf/NaN bit patterns).
        if K_pad > T * C_in:
            col_ref[T * C_in:K_pad, :] = jnp.zeros((K_pad - T * C_in, L), col_ref.dtype)

        # (4) The whole mixed cell (all selected ops, all taps, arch folded into wf)
        #     as ONE bf16 matmul with f32 accumulation; lane-dense f32 output store.
        out_ref[0] = jnp.dot(wf_ref[...], col_ref[...].astype(jnp.bfloat16),
                             preferred_element_type=jnp.float32)

    return kernel


def mixed_retrain_cell_forward(x_nchw, arch, w1_t, w3_t, wd_t):
    """x_nchw: [N, C_in, H, W]; returns [N, C_out, H_out, W_out] (PyTorch convention)."""
    N, C_in, H_in, W_in = x_nchw.shape
    C_out = w1_t.shape[0]
    scale = C_in / C_out
    H_out = scale_dimension(H_in, scale)
    W_out = scale_dimension(W_in, scale)
    HW_in, HW_out = H_in * W_in, H_out * W_out

    NB = _pick_batch_fold(N, HW_out)
    num_blocks = N // NB
    L = NB * HW_out

    offsets = _candidate_offsets(arch)
    assert offsets, "at least one candidate op must be selected by `arch`"
    T = len(offsets)
    shifts = [oy * W_out + ox for (oy, ox) in offsets]
    K_real = T * C_in
    K_pad = ((K_real + 7) // 8) * 8                     # sublane-aligned contraction dim

    # ---- shared bilinear operand: kron(A_h, A_w)^T (batch-independent, bf16) ----
    A_h = bilinear_matrix(H_in, H_out)
    A_w = bilinear_matrix(W_in, W_out)
    Kt = np.kron(A_h, A_w).T.astype(np.float32)         # [HW_in, HW_out]

    # ---- fused conv weight: arch selection + all taps folded, K padded to x8 ----
    w1 = np.asarray(w1_t, dtype=np.float32)
    w3 = np.asarray(w3_t, dtype=np.float32)
    wd = np.asarray(wd_t, dtype=np.float32)
    wmap = {o: np.zeros((C_out, C_in), np.float32) for o in offsets}
    if arch[0]:
        wmap[(0, 0)] += w1[:, :, 0, 0]
    if arch[1]:
        for dy in range(3):
            for dx in range(3):
                wmap[(dy - 1, dx - 1)] += w3[:, :, dy, dx]
    if arch[2]:
        for dy in range(3):
            for dx in range(3):
                wmap[(2 * (dy - 1), 2 * (dx - 1))] += wd[:, :, dy, dx]
    wf = np.zeros((C_out, K_pad), np.float32)
    wf[:, :K_real] = np.concatenate([wmap[o] for o in offsets], axis=1)

    # ---- per-tap validity masks over the flat (n, ho, wo) lane index (f32) ----
    lane = np.arange(L)
    wo = lane % W_out
    ho = (lane // W_out) % H_out
    maskx = np.zeros((K_pad, L), np.float32)
    for t, (oy, ox) in enumerate(offsets):
        m = ((ho + oy >= 0) & (ho + oy < H_out) &
             (wo + ox >= 0) & (wo + ox < W_out)).astype(np.float32)
        maskx[t * C_in:(t + 1) * C_in, :] = m

    # ---- x layout: [num_blocks, NB*C_in, HW_in] (n-major sublanes, lanes = Hin*Win) ----
    x_prep = x_nchw.reshape(num_blocks, NB * C_in, HW_in).astype(jnp.bfloat16)

    # bf16 col scratch only when per-tap row offsets stay packed-sublane aligned.
    col_dtype = jnp.bfloat16 if (C_in % 2 == 0) else jnp.float32
    col_itemsize = 2 if col_dtype == jnp.bfloat16 else 4

    kernel = _make_kernel(shifts, HW_out, C_in, NB, L, T, K_pad)

    # VMEM budget: double-buffered operands + scratch + headroom (tiny at these sizes;
    # capped at 64 MiB so the limit is valid on v7x as well).
    operand_bytes = (NB * C_in * HW_in * 2 + HW_in * HW_out * 2 +
                     C_out * K_pad * 2 + K_pad * L * 4 + C_out * L * 4)
    scratch_bytes = C_in * L * 4 + K_pad * L * col_itemsize
    vmem_limit = int(min(max(2 * operand_bytes + scratch_bytes + (8 << 20), 32 << 20),
                         64 << 20))

    out_flat = pl.pallas_call(
        kernel,
        out_shape=jax.ShapeDtypeStruct((num_blocks, C_out, L), jnp.float32),
        grid=(num_blocks,),
        in_specs=[
            pl.BlockSpec((1, NB * C_in, HW_in), lambda b: (b, 0, 0)),   # x (bf16, per block)
            pl.BlockSpec((HW_in, HW_out), lambda b: (0, 0)),            # resize matrix (bf16)
            pl.BlockSpec((C_out, K_pad), lambda b: (0, 0)),             # fused conv weight (bf16)
            pl.BlockSpec((K_pad, L), lambda b: (0, 0)),                 # tap validity masks (f32)
        ],
        out_specs=pl.BlockSpec((1, C_out, L), lambda b: (b, 0, 0)),     # lane-dense f32 slab
        scratch_shapes=[
            pltpu.VMEM((C_in, L), jnp.float32),                         # ReLU'd resized slab
            pltpu.VMEM((K_pad, L), col_dtype),                          # im2col operand
        ],
        compiler_params=pltpu.CompilerParams(
            dimension_semantics=("parallel",),
            vmem_limit_bytes=vmem_limit,
        ),
    )(
        x_prep,
        jnp.asarray(Kt).astype(jnp.bfloat16),
        jnp.asarray(wf).astype(jnp.bfloat16),
        jnp.asarray(maskx, jnp.float32),
    )

    # [num_blocks, C_out, (NB, H_out, W_out)] -> [N, C_out, H_out, W_out]
    out = out_flat.reshape(num_blocks, C_out, NB, H_out, W_out)
    out = jnp.transpose(out, (0, 2, 1, 3, 4)).reshape(N, C_out, H_out, W_out)
    return out


def reference_forward(x_nchw, arch, w1_t, w3_t, wd_t):
    """Pure-JAX f32 reference matching the same op semantics (for validation)."""
    N, C_in, H_in, W_in = x_nchw.shape
    C_out = w1_t.shape[0]
    scale = C_in / C_out
    H_out = scale_dimension(H_in, scale)
    W_out = scale_dimension(W_in, scale)
    A_h = jnp.asarray(bilinear_matrix(H_in, H_out))
    A_w = jnp.asarray(bilinear_matrix(W_in, W_out))
    xr = jnp.einsum('ip,jq,ncpq->ncij', A_h, A_w, x_nchw,
                    precision=jax.lax.Precision.HIGHEST)
    h = jnp.maximum(xr, 0.0)

    def conv(inp, w, p, dil):
        return jax.lax.conv_general_dilated(
            inp, w, window_strides=(1, 1), padding=[(p, p), (p, p)],
            rhs_dilation=(dil, dil), dimension_numbers=('NCHW', 'OIHW', 'NCHW'),
            precision=jax.lax.Precision.HIGHEST)

    out = jnp.zeros((N, C_out, H_out, W_out), jnp.float32)
    if arch[0]:
        out = out + conv(h, w1_t, 0, 1)
    if arch[1]:
        out = out + conv(h, w3_t, 1, 1)
    if arch[2]:
        out = out + conv(h, wd_t, 2, 2)
    return out


if __name__ == "__main__":
    N, C_in, C_out, H, W = 2, 4, 8, 16, 16   # scale = C_in/C_out = 0.5 -> 16x16 -> 8x8
    arch = [1, 1, 1]                          # all three candidate ops selected

    key = jax.random.PRNGKey(0)
    kx, k1, k2, k3 = jax.random.split(key, 4)

    x = jax.random.normal(kx, (N, C_in, H, W), dtype=jnp.float32)

    # Kaiming-normal conv weights (PyTorch [Cout, Cin, kh, kw] layout, bias-free)
    w1_t = jax.random.normal(k1, (C_out, C_in, 1, 1), jnp.float32) * float(np.sqrt(2.0 / (C_in * 1 * 1)))
    w3_t = jax.random.normal(k2, (C_out, C_in, 3, 3), jnp.float32) * float(np.sqrt(2.0 / (C_in * 3 * 3)))
    wd_t = jax.random.normal(k3, (C_out, C_in, 3, 3), jnp.float32) * float(np.sqrt(2.0 / (C_in * 3 * 3)))

    out = mixed_retrain_cell_forward(x, arch, w1_t, w3_t, wd_t)
    out = jax.block_until_ready(out)

    ref = reference_forward(x, arch, w1_t, w3_t, wd_t)
    assert out.shape == ref.shape == (N, C_out, 8, 8), (out.shape, ref.shape)
    max_err = float(jnp.max(jnp.abs(out - ref)))
    # End-to-end bf16 MXU operands (x, resize matrix, im2col slab, weights) vs an f32
    # reference: expected absolute error is ~1e-2-scale on O(1..4) outputs.
    assert max_err < 1e-1, f"kernel/reference mismatch: max abs err = {max_err}"

    print("KERNEL_OK")
</pallas_src>

<mosaic_0001>
module attributes {stable_mosaic.version = 11 : i64} {
  func.func @kernel(%arg0: i32, %arg1: memref<1x8x256xbf16, #tpu.memory_space<vmem>>, %arg2: memref<256x64xbf16, #tpu.memory_space<vmem>>, %arg3: memref<8x72xbf16, #tpu.memory_space<vmem>>, %arg4: memref<72x128xf32, #tpu.memory_space<vmem>>, %arg5: memref<1x8x128xf32, #tpu.memory_space<vmem>>, %arg6: memref<4x128xf32, #tpu.memory_space<vmem>>, %arg7: memref<72x128xbf16, #tpu.memory_space<vmem>>) attributes {dimension_semantics = [#tpu.dimension_semantics<parallel>], iteration_bounds = array<i64: 1>, scalar_prefetch = 0 : i64, scratch_operands = 2 : i64, tpu.core_type = #tpu.core_type<tc>, window_params = [{transform_indices = @transform_0, window_bounds = array<i64: 1, 8, 256>}, {pipeline_mode = #tpu.pipeline_mode<synchronous>, transform_indices = @transform_1, window_bounds = array<i64: 256, 64>}, {pipeline_mode = #tpu.pipeline_mode<synchronous>, transform_indices = @transform_2, window_bounds = array<i64: 8, 72>}, {pipeline_mode = #tpu.pipeline_mode<synchronous>, transform_indices = @transform_3, window_bounds = array<i64: 72, 128>}, {transform_indices = @transform_4, window_bounds = array<i64: 1, 8, 128>}]} {
    %c0 = arith.constant 0 : index
    %c0_0 = arith.constant 0 : index
    %c0_1 = arith.constant 0 : index
    %0 = vector.load %arg1[%c0, %c0_0, %c0_1] : memref<1x8x256xbf16, #tpu.memory_space<vmem>>, vector<1x8x256xbf16>
    %1 = vector.shape_cast %0 : vector<1x8x256xbf16> to vector<8x256xbf16>
    %c0_2 = arith.constant 0 : index
    %c0_3 = arith.constant 0 : index
    %2 = vector.load %arg2[%c0_2, %c0_3] : memref<256x64xbf16, #tpu.memory_space<vmem>>, vector<256x64xbf16>
    %cst = arith.constant dense<0.000000e+00> : vector<8x64xf32>
    %3 = tpu.matmul %1, %2, %cst {dimension_numbers = #tpu.dot_dimension_numbers<[1], [0], [0], [1], [0, 0, 1, 1], [], []>} : vector<8x256xbf16>, vector<256x64xbf16>, vector<8x64xf32> -> vector<8x64xf32>
    %cst_4 = arith.constant 0.000000e+00 : f32
    %4 = vector.broadcast %cst_4 : f32 to vector<8x64xf32>
    %5 = arith.maximumf %3, %4 : vector<8x64xf32>
    %6 = vector.extract_strided_slice %5 {offsets = [0, 0], sizes = [4, 64], strides = [1, 1]} : vector<8x64xf32> to vector<4x64xf32>
    %c0_5 = arith.constant 0 : index
    %c0_6 = arith.constant 0 : index
    %7 = vector.load %arg6[%c0_5, %c0_6] : memref<4x128xf32, #tpu.memory_space<vmem>>, vector<4x64xf32>
    tpu.vector_store %arg6[%c0_5, %c0_6], %6 {strides = array<i32>} : memref<4x128xf32, #tpu.memory_space<vmem>>, vector<4x64xf32>,
    %8 = vector.extract_strided_slice %5 {offsets = [4, 0], sizes = [4, 64], strides = [1, 1]} : vector<8x64xf32> to vector<4x64xf32>
    %c0_7 = arith.constant 0 : index
    %c64 = arith.constant 64 : index
    %9 = vector.load %arg6[%c0_7, %c64] : memref<4x128xf32, #tpu.memory_space<vmem>>, vector<4x64xf32>
    tpu.vector_store %arg6[%c0_7, %c64], %8 {strides = array<i32>} : memref<4x128xf32, #tpu.memory_space<vmem>>, vector<4x64xf32>,
    %c0_8 = arith.constant 0 : index
    %c0_9 = arith.constant 0 : index
    %10 = vector.load %arg6[%c0_8, %c0_9] : memref<4x128xf32, #tpu.memory_space<vmem>>, vector<4x128xf32>
    %c0_10 = arith.constant 0 : index
    %c0_11 = arith.constant 0 : index
    %11 = vector.load %arg4[%c0_10, %c0_11] : memref<72x128xf32, #tpu.memory_space<vmem>>, vector<4x128xf32>
    %12 = arith.mulf %10, %11 : vector<4x128xf32>
    %13 = arith.truncf %12 : vector<4x128xf32> to vector<4x128xbf16>
    %c0_12 = arith.constant 0 : index
    %c0_13 = arith.constant 0 : index
    %14 = vector.load %arg7[%c0_12, %c0_13] : memref<72x128xbf16, #tpu.memory_space<vmem>>, vector<4x128xbf16>
    tpu.vector_store %arg7[%c0_12, %c0_13], %13 {strides = array<i32>} : memref<72x128xbf16, #tpu.memory_space<vmem>>, vector<4x128xbf16>,
    %c9_i32 = arith.constant 9 : i32
    %15 = tpu.dynamic_rotate %10 by %c9_i32 dim 1 : vector<4x128xf32>, i32 -> vector<4x128xf32>
    %c4 = arith.constant 4 : index
    %c0_14 = arith.constant 0 : index
    %16 = vector.load %arg4[%c4, %c0_14] : memref<72x128xf32, #tpu.memory_space<vmem>>, vector<4x128xf32>
    %17 = arith.mulf %15, %16 : vector<4x128xf32>
    %18 = arith.truncf %17 : vector<4x128xf32> to vector<4x128xbf16>
    %c4_15 = arith.constant 4 : index
    %c0_16 = arith.constant 0 : index
    %19 = vector.load %arg7[%c4_15, %c0_16] : memref<72x128xbf16, #tpu.memory_space<vmem>>, vector<4x128xbf16>
    tpu.vector_store %arg7[%c4_15, %c0_16], %18 {strides = array<i32>} : memref<72x128xbf16, #tpu.memory_space<vmem>>, vector<4x128xbf16>,
    %c8_i32 = arith.constant 8 : i32
    %20 = tpu.dynamic_rotate %10 by %c8_i32 dim 1 : vector<4x128xf32>, i32 -> vector<4x128xf32>
    %c8 = arith.constant 8 : index
    %c0_17 = arith.constant 0 : index
    %21 = vector.load %arg4[%c8, %c0_17] : memref<72x128xf32, #tpu.memory_space<vmem>>, vector<4x128xf32>
    %22 = arith.mulf %20, %21 : vector<4x128xf32>
    %23 = arith.truncf %22 : vector<4x128xf32> to vector<4x128xbf16>
    %c8_18 = arith.constant 8 : index
    %c0_19 = arith.constant 0 : index
    %24 = vector.load %arg7[%c8_18, %c0_19] : memref<72x128xbf16, #tpu.memory_space<vmem>>, vector<4x128xbf16>
    tpu.vector_store %arg7[%c8_18, %c0_19], %23 {strides = array<i32>} : memref<72x128xbf16, #tpu.memory_space<vmem>>, vector<4x128xbf16>,
    %c7_i32 = arith.constant 7 : i32
    %25 = tpu.dynamic_rotate %10 by %c7_i32 dim 1 : vector<4x128xf32>, i32 -> vector<4x128xf32>
    %c12 = arith.constant 12 : index
    %c0_20 = arith.constant 0 : index
    %26 = vector.load %arg4[%c12, %c0_20] : memref<72x128xf32, #tpu.memory_space<vmem>>, vector<4x128xf32>
    %27 = arith.mulf %25, %26 : vector<4x128xf32>
    %28 = arith.truncf %27 : vector<4x128xf32> to vector<4x128xbf16>
    %c12_21 = arith.constant 12 : index
    %c0_22 = arith.constant 0 : index
    %29 = vector.load %arg7[%c12_21, %c0_22] : memref<72x128xbf16, #tpu.memory_space<vmem>>, vector<4x128xbf16>
    tpu.vector_store %arg7[%c12_21, %c0_22], %28 {strides = array<i32>} : memref<72x128xbf16, #tpu.memory_space<vmem>>, vector<4x128xbf16>,
    %c1_i32 = arith.constant 1 : i32
    %30 = tpu.dynamic_rotate %10 by %c1_i32 dim 1 : vector<4x128xf32>, i32 -> vector<4x128xf32>
    %c16 = arith.constant 16 : index
    %c0_23 = arith.constant 0 : index
    %31 = vector.load %arg4[%c16, %c0_23] : memref<72x128xf32, #tpu.memory_space<vmem>>, vector<4x128xf32>
    %32 = arith.mulf %30, %31 : vector<4x128xf32>
    %33 = arith.truncf %32 : vector<4x128xf32> to vector<4x128xbf16>
    %c16_24 = arith.constant 16 : index
    %c0_25 = arith.constant 0 : index
    %34 = vector.load %arg7[%c16_24, %c0_25] : memref<72x128xbf16, #tpu.memory_space<vmem>>, vector<4x128xbf16>
    tpu.vector_store %arg7[%c16_24, %c0_25], %33 {strides = array<i32>} : memref<72x128xbf16, #tpu.memory_space<vmem>>, vector<4x128xbf16>,
    %c127_i32 = arith.constant 127 : i32
    %35 = tpu.dynamic_rotate %10 by %c127_i32 dim 1 : vector<4x128xf32>, i32 -> vector<4x128xf32>
    %c20 = arith.constant 20 : index
    %c0_26 = arith.constant 0 : index
    %36 = vector.load %arg4[%c20, %c0_26] : memref<72x128xf32, #tpu.memory_space<vmem>>, vector<4x128xf32>
    %37 = arith.mulf %35, %36 : vector<4x128xf32>
    %38 = arith.truncf %37 : vector<4x128xf32> to vector<4x128xbf16>
    %c20_27 = arith.constant 20 : index
    %c0_28 = arith.constant 0 : index
    %39 = vector.load %arg7[%c20_27, %c0_28] : memref<72x128xbf16, #tpu.memory_space<vmem>>, vector<4x128xbf16>
    tpu.vector_store %arg7[%c20_27, %c0_28], %38 {strides = array<i32>} : memref<72x128xbf16, #tpu.memory_space<vmem>>, vector<4x128xbf16>,
    %c121_i32 = arith.constant 121 : i32
    %40 = tpu.dynamic_rotate %10 by %c121_i32 dim 1 : vector<4x128xf32>, i32 -> vector<4x128xf32>
    %c24 = arith.constant 24 : index
    %c0_29 = arith.constant 0 : index
    %41 = vector.load %arg4[%c24, %c0_29] : memref<72x128xf32, #tpu.memory_space<vmem>>, vector<4x128xf32>
    %42 = arith.mulf %40, %41 : vector<4x128xf32>
    %43 = arith.truncf %42 : vector<4x128xf32> to vector<4x128xbf16>
    %c24_30 = arith.constant 24 : index
    %c0_31 = arith.constant 0 : index
    %44 = vector.load %arg7[%c24_30, %c0_31] : memref<72x128xbf16, #tpu.memory_space<vmem>>, vector<4x128xbf16>
    tpu.vector_store %arg7[%c24_30, %c0_31], %43 {strides = array<i32>} : memref<72x128xbf16, #tpu.memory_space<vmem>>, vector<4x128xbf16>,
    %c120_i32 = arith.constant 120 : i32
    %45 = tpu.dynamic_rotate %10 by %c120_i32 dim 1 : vector<4x128xf32>, i32 -> vector<4x128xf32>
    %c28 = arith.constant 28 : index
    %c0_32 = arith.constant 0 : index
    %46 = vector.load %arg4[%c28, %c0_32] : memref<72x128xf32, #tpu.memory_space<vmem>>, vector<4x128xf32>
    %47 = arith.mulf %45, %46 : vector<4x128xf32>
    %48 = arith.truncf %47 : vector<4x128xf32> to vector<4x128xbf16>
    %c28_33 = arith.constant 28 : index
    %c0_34 = arith.constant 0 : index
    %49 = vector.load %arg7[%c28_33, %c0_34] : memref<72x128xbf16, #tpu.memory_space<vmem>>, vector<4x128xbf16>
    tpu.vector_store %arg7[%c28_33, %c0_34], %48 {strides = array<i32>} : memref<72x128xbf16, #tpu.memory_space<vmem>>, vector<4x128xbf16>,
    %c119_i32 = arith.constant 119 : i32
    %50 = tpu.dynamic_rotate %10 by %c119_i32 dim 1 : vector<4x128xf32>, i32 -> vector<4x128xf32>
    %c32 = arith.constant 32 : index
    %c0_35 = arith.constant 0 : index
    %51 = vector.load %arg4[%c32, %c0_35] : memref<72x128xf32, #tpu.memory_space<vmem>>, vector<4x128xf32>
    %52 = arith.mulf %50, %51 : vector<4x128xf32>
    %53 = arith.truncf %52 : vector<4x128xf32> to vector<4x128xbf16>
    %c32_36 = arith.constant 32 : index
    %c0_37 = arith.constant 0 : index
    %54 = vector.load %arg7[%c32_36, %c0_37] : memref<72x128xbf16, #tpu.memory_space<vmem>>, vector<4x128xbf16>
    tpu.vector_store %arg7[%c32_36, %c0_37], %53 {strides = array<i32>} : memref<72x128xbf16, #tpu.memory_space<vmem>>, vector<4x128xbf16>,
    %c18_i32 = arith.constant 18 : i32
    %55 = tpu.dynamic_rotate %10 by %c18_i32 dim 1 : vector<4x128xf32>, i32 -> vector<4x128xf32>
    %c36 = arith.constant 36 : index
    %c0_38 = arith.constant 0 : index
    %56 = vector.load %arg4[%c36, %c0_38] : memref<72x128xf32, #tpu.memory_space<vmem>>, vector<4x128xf32>
    %57 = arith.mulf %55, %56 : vector<4x128xf32>
    %58 = arith.truncf %57 : vector<4x128xf32> to vector<4x128xbf16>
    %c36_39 = arith.constant 36 : index
    %c0_40 = arith.constant 0 : index
    %59 = vector.load %arg7[%c36_39, %c0_40] : memref<72x128xbf16, #tpu.memory_space<vmem>>, vector<4x128xbf16>
    tpu.vector_store %arg7[%c36_39, %c0_40], %58 {strides = array<i32>} : memref<72x128xbf16, #tpu.memory_space<vmem>>, vector<4x128xbf16>,
    %c16_i32 = arith.constant 16 : i32
    %60 = tpu.dynamic_rotate %10 by %c16_i32 dim 1 : vector<4x128xf32>, i32 -> vector<4x128xf32>
    %c40 = arith.constant 40 : index
    %c0_41 = arith.constant 0 : index
    %61 = vector.load %arg4[%c40, %c0_41] : memref<72x128xf32, #tpu.memory_space<vmem>>, vector<4x128xf32>
    %62 = arith.mulf %60, %61 : vector<4x128xf32>
    %63 = arith.truncf %62 : vector<4x128xf32> to vector<4x128xbf16>
    %c40_42 = arith.constant 40 : index
    %c0_43 = arith.constant 0 : index
    %64 = vector.load %arg7[%c40_42, %c0_43] : memref<72x128xbf16, #tpu.memory_space<vmem>>, vector<4x128xbf16>
    tpu.vector_store %arg7[%c40_42, %c0_43], %63 {strides = array<i32>} : memref<72x128xbf16, #tpu.memory_space<vmem>>, vector<4x128xbf16>,
    %c14_i32 = arith.constant 14 : i32
    %65 = tpu.dynamic_rotate %10 by %c14_i32 dim 1 : vector<4x128xf32>, i32 -> vector<4x128xf32>
    %c44 = arith.constant 44 : index
    %c0_44 = arith.constant 0 : index
    %66 = vector.load %arg4[%c44, %c0_44] : memref<72x128xf32, #tpu.memory_space<vmem>>, vector<4x128xf32>
    %67 = arith.mulf %65, %66 : vector<4x128xf32>
    %68 = arith.truncf %67 : vector<4x128xf32> to vector<4x128xbf16>
    %c44_45 = arith.constant 44 : index
    %c0_46 = arith.constant 0 : index
    %69 = vector.load %arg7[%c44_45, %c0_46] : memref<72x128xbf16, #tpu.memory_space<vmem>>, vector<4x128xbf16>
    tpu.vector_store %arg7[%c44_45, %c0_46], %68 {strides = array<i32>} : memref<72x128xbf16, #tpu.memory_space<vmem>>, vector<4x128xbf16>,
    %c2_i32 = arith.constant 2 : i32
    %70 = tpu.dynamic_rotate %10 by %c2_i32 dim 1 : vector<4x128xf32>, i32 -> vector<4x128xf32>
    %c48 = arith.constant 48 : index
    %c0_47 = arith.constant 0 : index
    %71 = vector.load %arg4[%c48, %c0_47] : memref<72x128xf32, #tpu.memory_space<vmem>>, vector<4x128xf32>
    %72 = arith.mulf %70, %71 : vector<4x128xf32>
    %73 = arith.truncf %72 : vector<4x128xf32> to vector<4x128xbf16>
    %c48_48 = arith.constant 48 : index
    %c0_49 = arith.constant 0 : index
    %74 = vector.load %arg7[%c48_48, %c0_49] : memref<72x128xbf16, #tpu.memory_space<vmem>>, vector<4x128xbf16>
    tpu.vector_store %arg7[%c48_48, %c0_49], %73 {strides = array<i32>} : memref<72x128xbf16, #tpu.memory_space<vmem>>, vector<4x128xbf16>,
    %c126_i32 = arith.constant 126 : i32
    %75 = tpu.dynamic_rotate %10 by %c126_i32 dim 1 : vector<4x128xf32>, i32 -> vector<4x128xf32>
    %c52 = arith.constant 52 : index
    %c0_50 = arith.constant 0 : index
    %76 = vector.load %arg4[%c52, %c0_50] : memref<72x128xf32, #tpu.memory_space<vmem>>, vector<4x128xf32>
    %77 = arith.mulf %75, %76 : vector<4x128xf32>
    %78 = arith.truncf %77 : vector<4x128xf32> to vector<4x128xbf16>
    %c52_51 = arith.constant 52 : index
    %c0_52 = arith.constant 0 : index
    %79 = vector.load %arg7[%c52_51, %c0_52] : memref<72x128xbf16, #tpu.memory_space<vmem>>, vector<4x128xbf16>
    tpu.vector_store %arg7[%c52_51, %c0_52], %78 {strides = array<i32>} : memref<72x128xbf16, #tpu.memory_space<vmem>>, vector<4x128xbf16>,
    %c114_i32 = arith.constant 114 : i32
    %80 = tpu.dynamic_rotate %10 by %c114_i32 dim 1 : vector<4x128xf32>, i32 -> vector<4x128xf32>
    %c56 = arith.constant 56 : index
    %c0_53 = arith.constant 0 : index
    %81 = vector.load %arg4[%c56, %c0_53] : memref<72x128xf32, #tpu.memory_space<vmem>>, vector<4x128xf32>
    %82 = arith.mulf %80, %81 : vector<4x128xf32>
    %83 = arith.truncf %82 : vector<4x128xf32> to vector<4x128xbf16>
    %c56_54 = arith.constant 56 : index
    %c0_55 = arith.constant 0 : index
    %84 = vector.load %arg7[%c56_54, %c0_55] : memref<72x128xbf16, #tpu.memory_space<vmem>>, vector<4x128xbf16>
    tpu.vector_store %arg7[%c56_54, %c0_55], %83 {strides = array<i32>} : memref<72x128xbf16, #tpu.memory_space<vmem>>, vector<4x128xbf16>,
    %c112_i32 = arith.constant 112 : i32
    %85 = tpu.dynamic_rotate %10 by %c112_i32 dim 1 : vector<4x128xf32>, i32 -> vector<4x128xf32>
    %c60 = arith.constant 60 : index
    %c0_56 = arith.constant 0 : index
    %86 = vector.load %arg4[%c60, %c0_56] : memref<72x128xf32, #tpu.memory_space<vmem>>, vector<4x128xf32>
    %87 = arith.mulf %85, %86 : vector<4x128xf32>
    %88 = arith.truncf %87 : vector<4x128xf32> to vector<4x128xbf16>
    %c60_57 = arith.constant 60 : index
    %c0_58 = arith.constant 0 : index
    %89 = vector.load %arg7[%c60_57, %c0_58] : memref<72x128xbf16, #tpu.memory_space<vmem>>, vector<4x128xbf16>
    tpu.vector_store %arg7[%c60_57, %c0_58], %88 {strides = array<i32>} : memref<72x128xbf16, #tpu.memory_space<vmem>>, vector<4x128xbf16>,
    %c110_i32 = arith.constant 110 : i32
    %90 = tpu.dynamic_rotate %10 by %c110_i32 dim 1 : vector<4x128xf32>, i32 -> vector<4x128xf32>
    %c64_59 = arith.constant 64 : index
    %c0_60 = arith.constant 0 : index
    %91 = vector.load %arg4[%c64_59, %c0_60] : memref<72x128xf32, #tpu.memory_space<vmem>>, vector<4x128xf32>
    %92 = arith.mulf %90, %91 : vector<4x128xf32>
    %93 = arith.truncf %92 : vector<4x128xf32> to vector<4x128xbf16>
    %c64_61 = arith.constant 64 : index
    %c0_62 = arith.constant 0 : index
    %94 = vector.load %arg7[%c64_61, %c0_62] : memref<72x128xbf16, #tpu.memory_space<vmem>>, vector<4x128xbf16>
    tpu.vector_store %arg7[%c64_61, %c0_62], %93 {strides = array<i32>} : memref<72x128xbf16, #tpu.memory_space<vmem>>, vector<4x128xbf16>,
    %cst_63 = arith.constant 0.000000e+00 : bf16
    %95 = vector.broadcast %cst_63 : bf16 to vector<4x128xbf16>
    %c68 = arith.constant 68 : index
    %c0_64 = arith.constant 0 : index
    %96 = vector.load %arg7[%c68, %c0_64] : memref<72x128xbf16, #tpu.memory_space<vmem>>, vector<4x128xbf16>
    tpu.vector_store %arg7[%c68, %c0_64], %95 {strides = array<i32>} : memref<72x128xbf16, #tpu.memory_space<vmem>>, vector<4x128xbf16>,
    %c0_65 = arith.constant 0 : index
    %c0_66 = arith.constant 0 : index
    %97 = vector.load %arg3[%c0_65, %c0_66] : memref<8x72xbf16, #tpu.memory_space<vmem>>, vector<8x72xbf16>
    %c0_67 = arith.constant 0 : index
    %c0_68 = arith.constant 0 : index
    %98 = vector.load %arg7[%c0_67, %c0_68] : memref<72x128xbf16, #tpu.memory_space<vmem>>, vector<72x128xbf16>
    %cst_69 = arith.constant dense<0.000000e+00> : vector<8x128xf32>
    %99 = tpu.matmul %97, %98, %cst_69 {dimension_numbers = #tpu.dot_dimension_numbers<[1], [0], [0], [1], [0, 0, 1, 1], [], []>} : vector<8x72xbf16>, vector<72x128xbf16>, vector<8x128xf32> -> vector<8x128xf32>
    %c0_70 = arith.constant 0 : index
    %c0_71 = arith.constant 0 : index
    %c0_72 = arith.constant 0 : index
    %100 = vector.load %arg5[%c0_70, %c0_71, %c0_72] : memref<1x8x128xf32, #tpu.memory_space<vmem>>, vector<1x8x128xf32>
    %101 = vector.shape_cast %100 : vector<1x8x128xf32> to vector<8x128xf32>
    %102 = vector.shape_cast %99 : vector<8x128xf32> to vector<1x8x128xf32>
    tpu.vector_store %arg5[%c0_70, %c0_71, %c0_72], %102 {strides = array<i32>} : memref<1x8x128xf32, #tpu.memory_space<vmem>>, vector<1x8x128xf32>,
    return
  }
  func.func @transform_0(%arg0: i32) -> (i32, i32, i32) {
    %c0_i32 = arith.constant 0 : i32
    %c0_i32_0 = arith.constant 0 : i32
    %c0_i32_1 = arith.constant 0 : i32
    return %arg0, %c0_i32, %c0_i32_0 : i32, i32, i32
  }
  func.func @transform_1(%arg0: i32) -> (i32, i32) {
    %c0_i32 = arith.constant 0 : i32
    %c0_i32_0 = arith.constant 0 : i32
    %c0_i32_1 = arith.constant 0 : i32
    return %c0_i32, %c0_i32_0 : i32, i32
  }
  func.func @transform_2(%arg0: i32) -> (i32, i32) {
    %c0_i32 = arith.constant 0 : i32
    %c0_i32_0 = arith.constant 0 : i32
    %c0_i32_1 = arith.constant 0 : i32
    return %c0_i32, %c0_i32_0 : i32, i32
  }
  func.func @transform_3(%arg0: i32) -> (i32, i32) {
    %c0_i32 = arith.constant 0 : i32
    %c0_i32_0 = arith.constant 0 : i32
    %c0_i32_1 = arith.constant 0 : i32
    return %c0_i32, %c0_i32_0 : i32, i32
  }
  func.func @transform_4(%arg0: i32) -> (i32, i32, i32) {
    %c0_i32 = arith.constant 0 : i32
    %c0_i32_0 = arith.constant 0 : i32
    %c0_i32_1 = arith.constant 0 : i32
    return %arg0, %c0_i32, %c0_i32_0 : i32, i32, i32
  }
}

</mosaic_0001>

<bundles_post_ra>
// kernel: tpu_custom_call.1
= control target key start
LH: loop header
LB: loop body
LE: loop exit
PB: predicated region body
PF: predicated region fallthrough
CT: control target
= control target key end

     0   :  { %s753_s0 = inlined_call_operand.vmem [shape: bf16[1,8,256], index: 0, kind: input, shape index: {}]   ;;  %s754_s1 = inlined_call_operand.vmem [shape: bf16[256,64], index: 1, kind: input, shape index: {}]   ;;  %s755_s2 = inlined_call_operand.vmem [shape: bf16[8,72], index: 2, kind: input, shape index: {}]   ;;  %s756_s3 = inlined_call_operand.vmem [shape: f32[72,128], index: 3, kind: input, shape index: {}]   ;;  %s757_s4 = inlined_call_operand.hbm [shape: f32[1,8,128], index: 4, kind: output, shape index: {}]  }
   0x1   :  { %v549_v0 = vld [vmem:[%s754_s1 + $0x78] sm:$0xff]   ;;  %v551_v2 = vld [vmem:[%s754_s1 + $0x70] sm:$0xff]   ;;  %v553_v4 = vld [vmem:[%s754_s1 + $0x68] sm:$0xff]  }
   0x2   :  { %v550_v1 = vld [vmem:[%s754_s1 + $0x38] sm:$0xff]   ;;  %486 = vmatprep.subr.bf16.mxu0 %v549_v0  ;;  %v552_v3 = vld [vmem:[%s754_s1 + $0x30] sm:$0xff]   ;;  %v554_v5 = vld [vmem:[%s754_s1 + $0x28] sm:$0xff]  }
   0x3   :  { %487 = vmatpush3.bf16.msra.mxu0 %v550_v1  ;;  %v555_v6 = vld [vmem:[%s754_s1 + $0x60] sm:$0xff]   ;;  %v557_v8 = vld [vmem:[%s754_s1 + $0x58] sm:$0xff]   ;;  %v559_v10 = vld [vmem:[%s754_s1 + $0x50] sm:$0xff]  }
   0x4   :  { %488 = vmatprep.subr.bf16.mxu0 %v551_v2  ;;  %v556_v7 = vld [vmem:[%s754_s1 + $0x20] sm:$0xff]   ;;  %v558_v9 = vld [vmem:[%s754_s1 + $0x18] sm:$0xff]  }
   0x5   :  { %v19_v11 = vld [vmem:[%s753_s0] sm:$0xff] }
   0x7   :  { %489 = vmatpush3.bf16.msra.mxu0 %v552_v3 }
   0x8   :  { %490 = vmatprep.subr.bf16.mxu0 %v553_v4 }
   0xb   :  { %491 = vmatpush3.bf16.msra.mxu0 %v554_v5 }
   0xc   :  { %492 = vmatprep.subr.bf16.mxu0 %v555_v6 }
   0xf   :  { %493 = vmatpush3.bf16.msra.mxu0 %v556_v7 }
  0x10   :  { %494 = vmatprep.subr.bf16.mxu0 %v557_v8 }
  0x11   :  { %9 = vsyncpa [#allocation5], 0  ;;  %v447_v12 = vcombine.high %v19_v11, %v19_v11  ;;  %v560_v13 = vld [vmem:[%s754_s1 + $0x10] sm:$0xff]   ;;  %v561_v14 = vld [vmem:[%s754_s1 + $0x48] sm:$0xff]   ;;  %v446_v18 = vcombine.low %v19_v11, %v19_v11  ;;  %vm196_vm0 = vcmask 519168   ;;  %s594_s22 = smov 64  }
  0x12   :  { %v562_v15 = vld [vmem:[%s754_s1 + $0x8] sm:$0xff]   ;;  %v563_v16 = vld [vmem:[%s754_s1 + $0x40] sm:$0xff]   ;;  %vm202_vm1 = vcmask 1048068   ;;  %s596_s25 = smov 110   ;;  %v597_v29 = vmov 0.0   ;;  %s598_s26 = smov 112  }
  0x13   :  { %495 = vmatpush3.bf16.msra.mxu0 %v558_v9  ;;  %187 = vmatprep.mubr.bf16.mxu0 %v447_v12  ;;  %v564_v17 = vld [vmem:[%s754_s1] sm:$0xff]   ;;  %s595_s1 = smov 126   ;;  %s599_s27 = smov 2   ;;  %vm612_vm2 = vmmov 0   ;;  %v313_v31 = vld [vmem:[%s756_s3 + $0x34] sm:$0xf] }
  0x14   :  { %496 = vmatprep.subr.bf16.mxu0 %v559_v10  ;;  %v205_v26 = vld [vmem:[%s756_s3] sm:$0xf]  ;;  %514 = vmatprep.subr.bf16.mxu1 %v597_v29  ;;  %s600_s28 = smov 114   ;;  %s601_s29 = smov 18   ;;  %v330_v37 = vld [vmem:[%s756_s3 + $0x3c] sm:$0xf] }
  0x15   :  { %s602_s30 = smov 14   ;;  %s603_s5 = smov 119   ;;  %524 = vmatprep.mubr.msk.bf16.mxu1 %vm612_vm2, %v597_v29  ;;  %v341_v32 = vld [vmem:[%s756_s3 + $0x40] sm:$0xf]  ;;  %v307_v38 = vld [vmem:[%s756_s3 + $0x30] sm:$0xf] }
  0x16   :  { %s604_s6 = smov 16   ;;  %s605_s7 = smov 127   ;;  %v324_v46 = vld [vmem:[%s756_s3 + $0x38] sm:$0xf]  ;;  %v279_v47 = vld [vmem:[%s756_s3 + $0x24] sm:$0xf] }
  0x17   :  { %497 = vmatpush3.bf16.msra.mxu0 %v560_v13  ;;  %s606_s8 = smov 120   ;;  %s607_s9 = smov 1   ;;  %v296_v55 = vld [vmem:[%s756_s3 + $0x2c] sm:$0xf]  ;;  %v273_v56 = vld [vmem:[%s756_s3 + $0x20] sm:$0xf] }
  0x18   :  { %498 = vmatprep.subr.bf16.mxu0 %v561_v14  ;;  %s608_s10 = smov 121   ;;  %s609_s11 = smov 9   ;;  %vm387_vm3 = vcmask 1043456   ;;  %v290_v1 = vld [vmem:[%s756_s3 + $0x28] sm:$0xf]  ;;  %vm383_vm4 = vcmask 588800  }
  0x19   :  { %s610_s12 = smov 7   ;;  %s611_s13 = smov 8   ;;  %v245_v3 = vld [vmem:[%s756_s3 + $0x14] sm:$0xf]  ;;  %v262_v11 = vld [vmem:[%s756_s3 + $0x1c] sm:$0xf] }
  0x1a   :  { %v239_v12 = vld [vmem:[%s756_s3 + $0x10] sm:$0xf]  ;;  %s613_s0 = smov [#allocation4]  }
  0x1b   :  { %499 = vmatpush3.bf16.msra.mxu0 %v562_v15  ;;  %s438_s19 = sshll.u32 %s613_s0, 4  ;;  %s439_s19 = int_to_ptr.vmem [resolvable:$true] %s438_s19 }
  0x1c   :  { %500 = vmatprep.subr.bf16.mxu0 %v563_v16  ;;  %s572_s20 = scalar_lea.vmem %s439_s19, 128  ;;  %p577_p1 = scmp.lt.s32.totalorder %s439_s19, %s439_s19 }
  0x1d   :  { %p573_p0 = scmp.ne.s32.totalorder %s439_s19, %s572_s20  ;;  %p578_p2 = scmp.lt.s32.totalorder %s572_s20, %s572_s20 }
  0x1f   :  { %501 = vmatpush3.bf16.msra.mxu0 %v564_v17  ;;  %p579_p3 = por %p578_p2, %p577_p1 }
  0x21   :  { %p580_p4 = pnand %p579_p3, %p573_p0 }
  0x22   :  { %188 = vmatmul.mubr.bf16.vlgmr.msra.gmra.mxu0 %v446_v18 }
  0xe2   :  { %v502_v19 = vpop.f32.mrf.mxu0 }
  0xe4   :  { %v503_v20 = vpop.f32.mrf.mxu0 }
  0xe5   :  { %v504_v21 = vadd.f32 %v503_v20, %v502_v19 }
  0xe6   :  { %v505_v22 = vpop.f32.mrf.mxu0 }
  0xe7   :  { %v195_v23 = vmax.f32 %v504_v21, 0.0  ;;  %v256_v21 = vld [vmem:[%s756_s3 + $0x18] sm:$0xf]  ;;  %v211_v22 = vld [vmem:[%s756_s3 + $0x4] sm:$0xf] }
  0xe8   :  { %v506_v24 = vpop.f32.mrf.mxu0 }
  0xe9   :  { %197 = vst.msk [vmem:[#allocation2] sm:$0xf] %vm196_vm0, %v195_v23  ;;  %199 = vrot.lane.b32.xlu0 %v195_v23, %s594_s22 }
 0x15b   :  { %v200_v25 = vpop.permute.xlu0 %199 }
 0x15c   :  { %203 = vst.msk [vmem:[#allocation2 - $0x4] sm:$0xf0] %vm202_vm1, %v200_v25 }
 0x163   :  { %v204_v27 = vld [vmem:[#allocation2] sm:$0xf] }
 0x164   :  { %311 = vrot.lane.b32.xlu1 %v204_v27, %s595_s1  ;;  %339 = vrot.lane.b32.xlu0 %v204_v27, %s596_s25  ;;  %v206_v28 = vmul.f32 %v205_v26, %v204_v27 }
 0x166   :  { %v207_v30 = vpack.c.bf16 %v206_v28, %v206_v28 }
 0x168   :  { %328 = vrot.lane.b32.xlu1 %v204_v27, %s598_s26  ;;  %305 = vrot.lane.b32.xlu0 %v204_v27, %s599_s27  ;;  %208 = vst [vmem:[#allocation3] sm:$0x3] %v207_v30 }
 0x16c   :  { %322 = vrot.lane.b32.xlu1 %v204_v27, %s600_s28  ;;  %277 = vrot.lane.b32.xlu0 %v204_v27, %s601_s29 }
 0x170   :  { %294 = vrot.lane.b32.xlu1 %v204_v27, %s602_s30  ;;  %271 = vrot.lane.b32.xlu0 %v204_v27, %s603_s5 }
 0x174   :  { %288 = vrot.lane.b32.xlu1 %v204_v27, %s604_s6  ;;  %243 = vrot.lane.b32.xlu0 %v204_v27, %s605_s7 }
 0x178   :  { %260 = vrot.lane.b32.xlu1 %v204_v27, %s606_s8  ;;  %237 = vrot.lane.b32.xlu0 %v204_v27, %s607_s9 }
 0x17c   :  { %254 = vrot.lane.b32.xlu1 %v204_v27, %s608_s10  ;;  %209 = vrot.lane.b32.xlu0 %v204_v27, %s609_s11 }
 0x180   :  { %226 = vrot.lane.b32.xlu1 %v204_v27, %s610_s12  ;;  %220 = vrot.lane.b32.xlu0 %v204_v27, %s611_s13 }
 0x1d6   :  { %v312_v33 = vpop.permute.xlu1 %311  ;;  %v340_v34 = vpop.permute.xlu0 %339 }
 0x1d7   :  { %v314_v35 = vmul.f32 %v313_v31, %v312_v33  ;;  %v342_v36 = vmul.f32 %v341_v32, %v340_v34  ;;  %v228_v31 = vld [vmem:[%s756_s3 + $0xc] sm:$0xf]  ;;  %v222_v32 = vld [vmem:[%s756_s3 + $0x8] sm:$0xf] }
 0x1d9   :  { %v484_v39 = vpack.c.bf16 %v314_v35, %v314_v35  ;;  %v343_v40 = vpack.c.bf16 %v342_v36, %v342_v36 }
 0x1da   :  { %v329_v41 = vpop.permute.xlu1 %328  ;;  %v306_v42 = vpop.permute.xlu0 %305 }
 0x1db   :  { %v319_v43 = vrot.slane %v484_v39, 6  ;;  %344 = vst [vmem:[#allocation3 + $0x20] sm:$0x3] %v343_v40  ;;  %v331_v44 = vmul.f32 %v330_v37, %v329_v41  ;;  %v308_v45 = vmul.f32 %v307_v38, %v306_v42 }
 0x1dd   :  { %321 = vst [vmem:[#allocation3 + $0x18] sm:$0xc] %v319_v43  ;;  %v485_v48 = vpack.c.bf16 %v331_v44, %v331_v44  ;;  %v309_v49 = vpack.c.bf16 %v308_v45, %v308_v45 }
 0x1de   :  { %v323_v50 = vpop.permute.xlu1 %322  ;;  %v278_v51 = vpop.permute.xlu0 %277 }
 0x1df   :  { %v336_v52 = vrot.slane %v485_v48, 6  ;;  %310 = vst [vmem:[#allocation3 + $0x18] sm:$0x3] %v309_v49  ;;  %v325_v53 = vmul.f32 %v324_v46, %v323_v50  ;;  %v280_v54 = vmul.f32 %v279_v47, %v278_v51  ;;  %v346_v46 = vld [vmem:[%s755_s2] sm:$0xf] }
 0x1e1   :  { %338 = vst [vmem:[#allocation3 + $0x1c] sm:$0xc] %v336_v52  ;;  %v326_v57 = vpack.c.bf16 %v325_v53, %v325_v53  ;;  %v482_v58 = vpack.c.bf16 %v280_v54, %v280_v54 }
 0x1e2   :  { %v295_v59 = vpop.permute.xlu1 %294  ;;  %v272_v60 = vpop.permute.xlu0 %271  ;;  %v567_v61 = vld [vmem:[#allocation3 + $0x20] ss:$0 sps:$4 sm:$0xff]  }
 0x1e3   :  { %327 = vst [vmem:[#allocation3 + $0x1c] sm:$0x3] %v326_v57  ;;  %v285_v62 = vrot.slane %v482_v58, 6  ;;  %v297_v63 = vmul.f32 %v296_v55, %v295_v59  ;;  %v274_v0 = vmul.f32 %v273_v56, %v272_v60  ;;  %v389_v2 = vsel %vm387_vm3, %v567_v61, 0 }
 0x1e4   :  { %515 = vmatpush3.bf16.msra.mxu1 %v389_v2 }
 0x1e5   :  { %287 = vst [vmem:[#allocation3 + $0x10] sm:$0xc] %v285_v62  ;;  %v483_v4 = vpack.c.bf16 %v297_v63, %v297_v63  ;;  %v275_v5 = vpack.c.bf16 %v274_v0, %v274_v0  ;;  %516 = vmatprep.subr.bf16.mxu1 %v597_v29 }
 0x1e6   :  { %v289_v6 = vpop.permute.xlu1 %288  ;;  %v244_v7 = vpop.permute.xlu0 %243 }
 0x1e7   :  { %v302_v8 = vrot.slane %v483_v4, 6  ;;  %276 = vst [vmem:[#allocation3 + $0x10] sm:$0x3] %v275_v5  ;;  %v291_v9 = vmul.f32 %v290_v1, %v289_v6  ;;  %v246_v10 = vmul.f32 %v245_v3, %v244_v7 }
 0x1e9   :  { %304 = vst [vmem:[#allocation3 + $0x14] sm:$0xc] %v302_v8  ;;  %v292_v13 = vpack.c.bf16 %v291_v9, %v291_v9  ;;  %v480_v14 = vpack.c.bf16 %v246_v10, %v246_v10 }
 0x1ea   :  { %v261_v15 = vpop.permute.xlu1 %260  ;;  %v238_v16 = vpop.permute.xlu0 %237  ;;  %v568_v17 = vld [vmem:[#allocation3 + $0x18] sm:$0xff]  }
 0x1eb   :  { %293 = vst [vmem:[#allocation3 + $0x14] sm:$0x3] %v292_v13  ;;  %v251_v18 = vrot.slane %v480_v14, 6  ;;  %v263_v19 = vmul.f32 %v262_v11, %v261_v15  ;;  %v240_v20 = vmul.f32 %v239_v12, %v238_v16  ;;  %517 = vmatpush3.bf16.msra.mxu1 %v568_v17 }
 0x1ec   :  { %518 = vmatprep.subr.bf16.mxu1 %v597_v29 }
 0x1ed   :  { %253 = vst [vmem:[#allocation3 + $0x8] sm:$0xc] %v251_v18  ;;  %v481_v23 = vpack.c.bf16 %v263_v19, %v263_v19  ;;  %v241_v24 = vpack.c.bf16 %v240_v20, %v240_v20 }
 0x1ee   :  { %v255_v25 = vpop.permute.xlu1 %254  ;;  %v210_v26 = vpop.permute.xlu0 %209 }
 0x1ef   :  { %v268_v27 = vrot.slane %v481_v23, 6  ;;  %242 = vst [vmem:[#allocation3 + $0x8] sm:$0x3] %v241_v24  ;;  %v257_v28 = vmul.f32 %v256_v21, %v255_v25  ;;  %v212_v30 = vmul.f32 %v211_v22, %v210_v26 }
 0x1f1   :  { %270 = vst [vmem:[#allocation3 + $0xc] sm:$0xc] %v268_v27  ;;  %v258_v33 = vpack.c.bf16 %v257_v28, %v257_v28  ;;  %v478_v34 = vpack.c.bf16 %v212_v30, %v212_v30 }
 0x1f2   :  { %v227_v35 = vpop.permute.xlu1 %226  ;;  %v221_v36 = vpop.permute.xlu0 %220  ;;  %v569_v37 = vld [vmem:[#allocation3 + $0x10] sm:$0xff]  }
 0x1f3   :  { %259 = vst [vmem:[#allocation3 + $0xc] sm:$0x3] %v258_v33  ;;  %v217_v38 = vrot.slane %v478_v34, 6  ;;  %v229_v39 = vmul.f32 %v228_v31, %v227_v35  ;;  %v223_v40 = vmul.f32 %v222_v32, %v221_v36  ;;  %519 = vmatpush3.bf16.msra.mxu1 %v569_v37 }
 0x1f4   :  { %520 = vmatprep.subr.bf16.mxu1 %v597_v29 }
 0x1f5   :  { %219 = vst [vmem:[#allocation3] sm:$0xc] %v217_v38  ;;  %v479_v41 = vpack.c.bf16 %v229_v39, %v229_v39  ;;  %v224_v42 = vpack.c.bf16 %v223_v40, %v223_v40 }
 0x1f7   :  { %v234_v43 = vrot.slane %v479_v41, 6  ;;  %225 = vst [vmem:[#allocation3 + $0x4] sm:$0x3] %v224_v42 }
 0x1f9   :  { %236 = vst [vmem:[#allocation3 + $0x4] sm:$0xc] %v234_v43 }
 0x1fa   :  { %v570_v44 = vld [vmem:[#allocation3 + $0x8] sm:$0xff]  }
 0x1fb   :  { %521 = vmatpush3.bf16.msra.mxu1 %v570_v44 }
 0x1fc   :  { %522 = vmatprep.subr.bf16.mxu1 %v597_v29 }
 0x200   :  { %v571_v45 = vld [vmem:[#allocation3] sm:$0xff]  }
 0x201   :  { %523 = vmatpush3.bf16.msra.mxu1 %v571_v45 }
 0x204   :  { %525 = vmatmul.mubr.msk.bf16.vlgmr.msra.gmra.mxu1 %vm383_vm4, %v346_v46 }
 0x2c4   :  { %v425_v47 = vpop.f32.mrf.mxu1 }
 0x2c5   :  { %431 = vst [vmem:[#allocation4] sm:$0xff] %v425_v47 }
 0x2c6   :  { %v526_v48 = vpop.f32.mrf.mxu1 }
 0x2c7   :  { %583 = shalt.err (!%p580_p4)
}
 0x2c8   :  { %441 = dma.vmem_to_hbm [thread:$0]  %s439_s19, 128, %s757_s4, [#allocation5]   ;;  %v428_v29 = vpop.f32.mrf.mxu1 }
 0x2ca   :  { %v527_v49 = vpop.f32.mrf.mxu1 }
 0x2cb   :  { %592 = dma.done.wait [#allocation5], 128  }
 0x2cc   :  { %593 = vsyncadd [#allocation5], 4294967168 }
 0x2cd   :  { %445 = vsyncpa [#allocation5], 1 }

</bundles_post_ra>
